<compile_context>
chip_gen: v5e
topology: v5e:2x2
jax: 0.10.0
libtpu: 0.0.40
codegen_flags: <defaults>
</compile_context>

<pallas_src>
import jax
import jax.numpy as jnp
from jax.experimental import pallas as pl
from jax.experimental.pallas import tpu as pltpu


def init_scalar_param(init_value):
    """Mirror of `nn.Parameter(torch.tensor(init_value))`, stored as f32[1]."""
    return jnp.full((1,), init_value, dtype=jnp.float32)


def scalar_forward(constant):
    """Recommended path: Scalar.forward() is a pass-through, so no kernel.

    Returns the 0-d parameter value; this is free and lets XLA constant-fold
    / fuse the scalar into its consumer.
    """
    return constant.reshape(())


def _scalar_kernel(const_ref, out_ref):
    # Single scalar copy on the scalar (SMEM / sreg) path; 1-D indexing.
    out_ref[0] = const_ref[0]


def scalar_forward_pallas(constant):
    """Minimal Pallas pass-through of the f32[1] parameter.

    Kept only as a kernel placeholder; `scalar_forward` above is the
    zero-overhead version.
    """
    smem_spec = pl.BlockSpec(memory_space=pltpu.SMEM)
    out = pl.pallas_call(
        _scalar_kernel,
        out_shape=jax.ShapeDtypeStruct((1,), jnp.float32),
        in_specs=[smem_spec],
        out_specs=smem_spec,
        # Output buffer aliases the parameter buffer: no separate output
        # allocation / writeback target.
        input_output_aliases={0: 0},
        # Tell XLA this custom call is essentially free.
        cost_estimate=pl.CostEstimate(flops=0, transcendentals=0,
                                      bytes_accessed=4),
    )(constant)
    # Squeeze to 0-d with a reshape (free) to match the module's 0-d output.
    return out.reshape(())


if __name__ == "__main__":
    # Deterministic "input": the module's only state is its init_value.
    key = jax.random.PRNGKey(0)
    init_value = float(jax.random.normal(key, (), dtype=jnp.float32))

    constant = init_scalar_param(init_value)

    # Fast (no-kernel) path — the production recommendation.
    out_direct = jax.block_until_ready(scalar_forward(constant))

    # Pallas kernel path.
    out_pallas = jax.block_until_ready(scalar_forward_pallas(constant))

    # Reference: Scalar.forward() just returns the parameter itself.
    assert out_direct.shape == ()
    assert out_pallas.shape == ()
    assert jnp.allclose(out_pallas, out_direct, atol=0.0, rtol=0.0)
    assert jnp.allclose(out_pallas, jnp.float32(init_value), atol=1e-7, rtol=1e-7)

    print("KERNEL_OK")
</pallas_src>

<mosaic_0001>
module attributes {stable_mosaic.version = 11 : i64} {
  func.func @_scalar_kernel(%arg0: memref<1xf32, #tpu.memory_space<smem>>, %arg1: memref<1xf32, #tpu.memory_space<smem>>) attributes {dimension_semantics = [], scalar_prefetch = 0 : i64, scratch_operands = 0 : i64, tpu.core_type = #tpu.core_type<tc>} {
    %c0 = arith.constant 0 : index
    %0 = memref.load %arg0[%c0] : memref<1xf32, #tpu.memory_space<smem>>
    %c0_0 = arith.constant 0 : index
    %1 = memref.load %arg1[%c0_0] : memref<1xf32, #tpu.memory_space<smem>>
    memref.store %0, %arg1[%c0_0] : memref<1xf32, #tpu.memory_space<smem>>
    return
  }
}

</mosaic_0001>

<bundles_post_ra>
// kernel: tpu_custom_call.1
= control target key start
LH: loop header
LB: loop body
LE: loop exit
PB: predicated region body
PF: predicated region fallthrough
CT: control target
= control target key end

     0   :  { %7 = vsyncpa [#allocation4], 0  ;;  %s43_s11 = smov [#allocation3]   ;;  %s60_s0 = inlined_call_operand.<no memory space> [shape: f32[1], index: 0, kind: input, shape index: {}, may-alias: {0,1}]   ;;  %s61_s1 = inlined_call_operand.hbm [shape: f32[1], index: 1, kind: output, shape index: {}, may-alias: {0,1}]  }
   0x1   :  { %12 = sst [smem:[#allocation3]] %s60_s0  ;;  %s18_s10 = sshll.u32 %s61_s1, 4  ;;  %s19_s10 = int_to_ptr.hbm [resolvable:$true] %s18_s10 }
   0x2   :  { %21 = dma.smem_to_hbm %s43_s11, 16, %s19_s10, [#allocation4]  }
   0x3   :  { %41 = dma.done.wait [#allocation4], 16  }
   0x4   :  { %42 = vsyncadd [#allocation4], 4294967280 }
   0x5   :  { %26 = sfence }
   0x6   :  { %27 = vsyncpa [#allocation4], 1 }

</bundles_post_ra>
